<compile_context>
chip_gen: v6e
topology: v6e:2x2x1
jax: 0.10.0
libtpu: 0.0.40
codegen_flags: <defaults>
</compile_context>

<pallas_src>
import functools

import jax
import jax.numpy as jnp
import numpy as np
from jax.experimental import pallas as pl
from jax.experimental.pallas import tpu as pltpu


def _round_up(x, m):
    return (x + m - 1) // m * m


def _pick_row_tile(rows, limit=512):
    """Sub-tile of the flattened output rows: largest divisor <= limit (prefer mult. of 128)."""
    if rows <= limit:
        return rows
    fallback = None
    for d in range(limit, 127, -1):
        if rows % d == 0:
            if d % 128 == 0:
                return d
            if fallback is None:
                fallback = d
    return fallback if fallback is not None else rows


def _conv_subtile(x_ref, w_ref, slab_ref, r0, *, K, stride, W, Cin_p, TR):
    """One rows-subtile of the temporal conv, result channel-major in f32.

    x_ref:    (stride*Cin_p, Hr*W)  bf16  flattened, zero-padded, channel-first input block
    w_ref:    (C_outp, K*Cin_p)     bf16  weights, column index = k*Cin_p + c
    slab_ref: (K*Cin_p, TR)         bf16  VMEM scratch holding the folded-contraction RHS
    returns:  (C_outp, TR)          f32
    """
    for k in range(K):                                   # static unroll, K is small (e.g. 9)
        res = k % stride
        off = r0 + (k // stride) * W                     # static lane-shifted window
        slab_ref[pl.ds(k * Cin_p, Cin_p), :] = x_ref[pl.ds(res * Cin_p, Cin_p), pl.ds(off, TR)]
    # One MXU matmul with contraction depth K*Cin_p; result is already channel-major.
    return jnp.dot(w_ref[...], slab_ref[...], preferred_element_type=jnp.float32)


def _stats_kernel(x_ref, w_ref, sum_ref, sq_ref, slab_ref, *,
                  K, stride, W, Cin_p, C_outp, rows, TR):
    """Pass 1: conv (recomputed, not stored) + per-sample BN partial sums."""
    s_acc = jnp.zeros((C_outp, 1), jnp.float32)
    q_acc = jnp.zeros((C_outp, 1), jnp.float32)
    for t in range(rows // TR):                          # static sub-tile loop
        acc = _conv_subtile(x_ref, w_ref, slab_ref, t * TR,
                            K=K, stride=stride, W=W, Cin_p=Cin_p, TR=TR)
        s_acc = s_acc + jnp.sum(acc, axis=1, keepdims=True)
        q_acc = q_acc + jnp.sum(acc * acc, axis=1, keepdims=True)
    sum_ref[...] = s_acc
    sq_ref[...] = q_acc


def _apply_kernel(x_ref, w_ref, scale_ref, shift_ref, o_ref, slab_ref, *,
                  K, stride, W, Cin_p, C_out, rows, TR):
    """Pass 2: recompute conv, apply BN scale/shift, write NCHW-layout output."""
    for t in range(rows // TR):
        acc = _conv_subtile(x_ref, w_ref, slab_ref, t * TR,
                            K=K, stride=stride, W=W, Cin_p=Cin_p, TR=TR)
        y = acc[:C_out, :] * scale_ref[...] + shift_ref[...]
        o_ref[:, pl.ds(t * TR, TR)] = y.astype(o_ref.dtype)


def temporal_conv_forward(x, weight, bias, gamma, beta,
                          kernel_size=9, stride=1, eps=1e-5):
    """Forward of TemporalConv: conv (K,1) + training-mode BatchNorm2d.  x: (N, C_in, H, W) f32."""
    del bias  # exact cancellation: BN(conv(x) + b) == gamma*(conv(x) - mean(conv))/std + beta
    N, C_in, H, W = x.shape
    C_out = weight.shape[0]
    K = kernel_size
    s = stride
    P = (K - 1) // 2
    Hp = H + 2 * P
    H_out = (Hp - K) // s + 1
    rows = H_out * W
    Cin_p = _round_up(C_in, 8)
    C_outp = _round_up(C_out, 8)

    # ---- XLA prep (one pass over x: pad channels/H, cast to bf16, flatten spatial). ----
    xp = jnp.pad(x.astype(jnp.bfloat16),
                 ((0, 0), (0, Cin_p - C_in), (P, P), (0, 0)))          # (N, Cin_p, Hp, W)
    if s == 1:
        Hr = Hp
        xres = xp.reshape(N, Cin_p, Hp * W)                            # (N, Cin_p, Hp*W)
    else:
        # Residue decomposition of the H axis: tap k uses residue k%s with lane shift (k//s)*W.
        Hr = (Hp - 1) // s + 1
        parts = []
        for r in range(s):
            xr = xp[:, :, r::s, :]
            xr = jnp.pad(xr, ((0, 0), (0, 0), (0, Hr - xr.shape[2]), (0, 0)))
            parts.append(xr)
        xres = jnp.stack(parts, axis=1).reshape(N, s * Cin_p, Hr * W)  # (N, s*Cin_p, Hr*W)

    # Weights: (C_out, C_in, K, 1) -> (C_outp, K*Cin_p) with column index = k*Cin_p + c.
    w3 = jnp.pad(weight[:, :, :, 0], ((0, C_outp - C_out), (0, Cin_p - C_in), (0, 0)))
    wt = jnp.transpose(w3, (0, 2, 1)).reshape(C_outp, K * Cin_p).astype(jnp.bfloat16)

    TR = _pick_row_tile(rows)
    assert rows % TR == 0

    # ---- padding-aware VMEM working-set estimate -> explicit per-kernel vmem limit. ----
    def _lane(n):
        return _round_up(n, 128)
    x_blk = s * Cin_p * _lane(Hr * W) * 2
    w_blk = C_outp * _lane(K * Cin_p) * 2
    out_blk = C_outp * _lane(rows) * 4
    slab_blk = _round_up(K * Cin_p, 8) * _lane(TR) * 2
    acc_blk = C_outp * _lane(TR) * 4
    est = 2 * x_blk + w_blk + 2 * out_blk + slab_blk + 2 * acc_blk + (2 << 20)
    vmem_limit = int(min(max(2 * est, 32 << 20), 56 << 20))
    # TODO(synk): if `est` approaches v7x's 64 MiB physical VMEM (very long H), also tile H
    # across the grid; not needed for typical ST-GCN shapes.

    grid = (N,)
    flops_conv = 2 * N * rows * K * C_in * C_out

    # ---- pass 1: conv + per-sample BN partial sums (no conv-result HBM round-trip). ----
    kernel1 = functools.partial(_stats_kernel, K=K, stride=s, W=W, Cin_p=Cin_p,
                                C_outp=C_outp, rows=rows, TR=TR)
    ysum, ysq = pl.pallas_call(
        kernel1,
        out_shape=(jax.ShapeDtypeStruct((N, C_outp, 1), jnp.float32),
                   jax.ShapeDtypeStruct((N, C_outp, 1), jnp.float32)),
        grid_spec=pltpu.PrefetchScalarGridSpec(
            num_scalar_prefetch=0,
            grid=grid,
            in_specs=[pl.BlockSpec((None, s * Cin_p, Hr * W), lambda n: (n, 0, 0)),
                      pl.BlockSpec((C_outp, K * Cin_p), lambda n: (0, 0))],
            out_specs=(pl.BlockSpec((None, C_outp, 1), lambda n: (n, 0, 0)),
                       pl.BlockSpec((None, C_outp, 1), lambda n: (n, 0, 0))),
            scratch_shapes=[pltpu.VMEM((K * Cin_p, TR), jnp.bfloat16)]),
        compiler_params=pltpu.CompilerParams(
            dimension_semantics=("parallel",),
            vmem_limit_bytes=vmem_limit),
        cost_estimate=pl.CostEstimate(
            flops=flops_conv, transcendentals=0,
            bytes_accessed=int(xres.size * 2 + wt.size * 2 + 2 * N * C_outp * 4)),
    )(xres, wt)

    # ---- finalize BN batch statistics in XLA (tiny, per-channel). ----
    M_total = N * rows
    ssum = jnp.sum(ysum[:, :C_out, 0], axis=0)                       # (C_out,)
    ssq = jnp.sum(ysq[:, :C_out, 0], axis=0)
    mean = ssum / M_total
    var = jnp.maximum(ssq / M_total - mean * mean, 0.0)              # biased (training-mode)
    inv_std = jax.lax.rsqrt(var + eps)
    scale = (gamma * inv_std).reshape(C_out, 1).astype(jnp.float32)
    shift = (beta - mean * gamma * inv_std).reshape(C_out, 1).astype(jnp.float32)
    # TODO(synk): running_mean/running_var momentum updates are stateful nn.Module buffers and
    # not part of the returned forward value; not implemented.

    # ---- pass 2: recompute conv, apply scale/shift, write channel-major (== NCHW) output. ----
    kernel2 = functools.partial(_apply_kernel, K=K, stride=s, W=W, Cin_p=Cin_p,
                                C_out=C_out, rows=rows, TR=TR)
    out_flat = pl.pallas_call(
        kernel2,
        out_shape=jax.ShapeDtypeStruct((N, C_out, rows), jnp.float32),
        grid_spec=pltpu.PrefetchScalarGridSpec(
            num_scalar_prefetch=0,
            grid=grid,
            in_specs=[pl.BlockSpec((None, s * Cin_p, Hr * W), lambda n: (n, 0, 0)),
                      pl.BlockSpec((C_outp, K * Cin_p), lambda n: (0, 0)),
                      pl.BlockSpec((C_out, 1), lambda n: (0, 0)),
                      pl.BlockSpec((C_out, 1), lambda n: (0, 0))],
            out_specs=pl.BlockSpec((None, C_out, rows), lambda n: (n, 0, 0)),
            scratch_shapes=[pltpu.VMEM((K * Cin_p, TR), jnp.bfloat16)]),
        compiler_params=pltpu.CompilerParams(
            dimension_semantics=("parallel",),
            vmem_limit_bytes=vmem_limit),
        cost_estimate=pl.CostEstimate(
            flops=flops_conv + 2 * N * C_out * rows, transcendentals=0,
            bytes_accessed=int(xres.size * 2 + wt.size * 2
                               + N * C_out * rows * 4 + 2 * C_out * 4)),
    )(xres, wt, scale, shift)

    # Free metadata reshape: (N, C_out, H_out*W) -> (N, C_out, H_out, W).  No transpose pass.
    return out_flat.reshape(N, C_out, H_out, W)


def _reference(x, weight, bias, gamma, beta, kernel_size=9, stride=1, eps=1e-5):
    P = (kernel_size - 1) // 2
    y = jax.lax.conv_general_dilated(
        x, weight, window_strides=(stride, 1), padding=((P, P), (0, 0)),
        dimension_numbers=("NCHW", "OIHW", "NCHW"))
    y = y + bias.reshape(1, -1, 1, 1)
    mean = jnp.mean(y, axis=(0, 2, 3), keepdims=True)
    var = jnp.var(y, axis=(0, 2, 3), keepdims=True)
    g = gamma.reshape(1, -1, 1, 1)
    b = beta.reshape(1, -1, 1, 1)
    return (y - mean) / jnp.sqrt(var + eps) * g + b


if __name__ == "__main__":
    key = jax.random.PRNGKey(0)
    kx, kw, kb = jax.random.split(key, 3)

    # Small shapes consistent with the module's forward (NCHW input).
    N, C_in, H, W = 2, 4, 16, 16
    C_out, K, stride = 8, 9, 1

    x = jax.random.normal(kx, (N, C_in, H, W), jnp.float32)

    # Deterministic parameter init (PyTorch-like uniform(-1/sqrt(fan_in), +1/sqrt(fan_in))).
    fan_in = C_in * K * 1
    bound = 1.0 / np.sqrt(fan_in)
    weight = jax.random.uniform(kw, (C_out, C_in, K, 1), jnp.float32, -bound, bound)
    bias = jax.random.uniform(kb, (C_out,), jnp.float32, -bound, bound)
    gamma = jnp.ones((C_out,), jnp.float32)    # BatchNorm2d default weight
    beta = jnp.zeros((C_out,), jnp.float32)    # BatchNorm2d default bias

    fwd = jax.jit(functools.partial(temporal_conv_forward, kernel_size=K, stride=stride))
    out = fwd(x, weight, bias, gamma, beta)
    out = jax.block_until_ready(out)

    ref = _reference(x, weight, bias, gamma, beta, kernel_size=K, stride=stride)
    # bf16 operand streams (x, weights) -> bf16-level tolerance vs. the pure-f32 reference.
    np.testing.assert_allclose(np.asarray(out), np.asarray(ref), rtol=2e-2, atol=3e-2)

    print("KERNEL_OK")
</pallas_src>

<mosaic_0001>
module attributes {stable_mosaic.version = 11 : i64} {
  func.func @_stats_kernel(%arg0: i32, %arg1: memref<1x8x384xbf16, #tpu.memory_space<vmem>>, %arg2: memref<8x72xbf16, #tpu.memory_space<vmem>>, %arg3: memref<1x8x1xf32, #tpu.memory_space<vmem>>, %arg4: memref<1x8x1xf32, #tpu.memory_space<vmem>>, %arg5: memref<72x256xbf16, #tpu.memory_space<vmem>>) attributes {dimension_semantics = [#tpu.dimension_semantics<parallel>], iteration_bounds = array<i64: 2>, scalar_prefetch = 0 : i64, scratch_operands = 1 : i64, tpu.core_type = #tpu.core_type<tc>, window_params = [{transform_indices = @transform_0, window_bounds = array<i64: 1, 8, 384>}, {pipeline_mode = #tpu.pipeline_mode<synchronous>, transform_indices = @transform_1, window_bounds = array<i64: 8, 72>}, {transform_indices = @transform_2, window_bounds = array<i64: 1, 8, 1>}, {transform_indices = @transform_3, window_bounds = array<i64: 1, 8, 1>}]} {
    %cst = arith.constant 0.000000e+00 : f32
    %0 = vector.broadcast %cst : f32 to vector<8x1xf32>
    %cst_0 = arith.constant 0.000000e+00 : f32
    %1 = vector.broadcast %cst_0 : f32 to vector<8x1xf32>
    %c0 = arith.constant 0 : index
    %c0_1 = arith.constant 0 : index
    %c0_2 = arith.constant 0 : index
    %2 = vector.load %arg1[%c0, %c0_1, %c0_2] : memref<1x8x384xbf16, #tpu.memory_space<vmem>>, vector<1x8x256xbf16>
    %3 = vector.shape_cast %2 : vector<1x8x256xbf16> to vector<8x256xbf16>
    %c0_3 = arith.constant 0 : index
    %c0_4 = arith.constant 0 : index
    %4 = vector.load %arg5[%c0_3, %c0_4] : memref<72x256xbf16, #tpu.memory_space<vmem>>, vector<8x256xbf16>
    tpu.vector_store %arg5[%c0_3, %c0_4], %3 {strides = array<i32>} : memref<72x256xbf16, #tpu.memory_space<vmem>>, vector<8x256xbf16>,
    %c0_5 = arith.constant 0 : index
    %c0_6 = arith.constant 0 : index
    %c16 = arith.constant 16 : index
    %5 = vector.load %arg1[%c0_5, %c0_6, %c16] : memref<1x8x384xbf16, #tpu.memory_space<vmem>>, vector<1x8x256xbf16>
    %6 = vector.shape_cast %5 : vector<1x8x256xbf16> to vector<8x256xbf16>
    %c8 = arith.constant 8 : index
    %c0_7 = arith.constant 0 : index
    %7 = vector.load %arg5[%c8, %c0_7] : memref<72x256xbf16, #tpu.memory_space<vmem>>, vector<8x256xbf16>
    tpu.vector_store %arg5[%c8, %c0_7], %6 {strides = array<i32>} : memref<72x256xbf16, #tpu.memory_space<vmem>>, vector<8x256xbf16>,
    %c0_8 = arith.constant 0 : index
    %c0_9 = arith.constant 0 : index
    %c32 = arith.constant 32 : index
    %8 = vector.load %arg1[%c0_8, %c0_9, %c32] : memref<1x8x384xbf16, #tpu.memory_space<vmem>>, vector<1x8x256xbf16>
    %9 = vector.shape_cast %8 : vector<1x8x256xbf16> to vector<8x256xbf16>
    %c16_10 = arith.constant 16 : index
    %c0_11 = arith.constant 0 : index
    %10 = vector.load %arg5[%c16_10, %c0_11] : memref<72x256xbf16, #tpu.memory_space<vmem>>, vector<8x256xbf16>
    tpu.vector_store %arg5[%c16_10, %c0_11], %9 {strides = array<i32>} : memref<72x256xbf16, #tpu.memory_space<vmem>>, vector<8x256xbf16>,
    %c0_12 = arith.constant 0 : index
    %c0_13 = arith.constant 0 : index
    %c48 = arith.constant 48 : index
    %11 = vector.load %arg1[%c0_12, %c0_13, %c48] : memref<1x8x384xbf16, #tpu.memory_space<vmem>>, vector<1x8x256xbf16>
    %12 = vector.shape_cast %11 : vector<1x8x256xbf16> to vector<8x256xbf16>
    %c24 = arith.constant 24 : index
    %c0_14 = arith.constant 0 : index
    %13 = vector.load %arg5[%c24, %c0_14] : memref<72x256xbf16, #tpu.memory_space<vmem>>, vector<8x256xbf16>
    tpu.vector_store %arg5[%c24, %c0_14], %12 {strides = array<i32>} : memref<72x256xbf16, #tpu.memory_space<vmem>>, vector<8x256xbf16>,
    %c0_15 = arith.constant 0 : index
    %c0_16 = arith.constant 0 : index
    %c64 = arith.constant 64 : index
    %14 = vector.load %arg1[%c0_15, %c0_16, %c64] : memref<1x8x384xbf16, #tpu.memory_space<vmem>>, vector<1x8x256xbf16>
    %15 = vector.shape_cast %14 : vector<1x8x256xbf16> to vector<8x256xbf16>
    %c32_17 = arith.constant 32 : index
    %c0_18 = arith.constant 0 : index
    %16 = vector.load %arg5[%c32_17, %c0_18] : memref<72x256xbf16, #tpu.memory_space<vmem>>, vector<8x256xbf16>
    tpu.vector_store %arg5[%c32_17, %c0_18], %15 {strides = array<i32>} : memref<72x256xbf16, #tpu.memory_space<vmem>>, vector<8x256xbf16>,
    %c0_19 = arith.constant 0 : index
    %c0_20 = arith.constant 0 : index
    %c80 = arith.constant 80 : index
    %17 = vector.load %arg1[%c0_19, %c0_20, %c80] : memref<1x8x384xbf16, #tpu.memory_space<vmem>>, vector<1x8x256xbf16>
    %18 = vector.shape_cast %17 : vector<1x8x256xbf16> to vector<8x256xbf16>
    %c40 = arith.constant 40 : index
    %c0_21 = arith.constant 0 : index
    %19 = vector.load %arg5[%c40, %c0_21] : memref<72x256xbf16, #tpu.memory_space<vmem>>, vector<8x256xbf16>
    tpu.vector_store %arg5[%c40, %c0_21], %18 {strides = array<i32>} : memref<72x256xbf16, #tpu.memory_space<vmem>>, vector<8x256xbf16>,
    %c0_22 = arith.constant 0 : index
    %c0_23 = arith.constant 0 : index
    %c96 = arith.constant 96 : index
    %20 = vector.load %arg1[%c0_22, %c0_23, %c96] : memref<1x8x384xbf16, #tpu.memory_space<vmem>>, vector<1x8x256xbf16>
    %21 = vector.shape_cast %20 : vector<1x8x256xbf16> to vector<8x256xbf16>
    %c48_24 = arith.constant 48 : index
    %c0_25 = arith.constant 0 : index
    %22 = vector.load %arg5[%c48_24, %c0_25] : memref<72x256xbf16, #tpu.memory_space<vmem>>, vector<8x256xbf16>
    tpu.vector_store %arg5[%c48_24, %c0_25], %21 {strides = array<i32>} : memref<72x256xbf16, #tpu.memory_space<vmem>>, vector<8x256xbf16>,
    %c0_26 = arith.constant 0 : index
    %c0_27 = arith.constant 0 : index
    %c112 = arith.constant 112 : index
    %23 = vector.load %arg1[%c0_26, %c0_27, %c112] : memref<1x8x384xbf16, #tpu.memory_space<vmem>>, vector<1x8x256xbf16>
    %24 = vector.shape_cast %23 : vector<1x8x256xbf16> to vector<8x256xbf16>
    %c56 = arith.constant 56 : index
    %c0_28 = arith.constant 0 : index
    %25 = vector.load %arg5[%c56, %c0_28] : memref<72x256xbf16, #tpu.memory_space<vmem>>, vector<8x256xbf16>
    tpu.vector_store %arg5[%c56, %c0_28], %24 {strides = array<i32>} : memref<72x256xbf16, #tpu.memory_space<vmem>>, vector<8x256xbf16>,
    %c0_29 = arith.constant 0 : index
    %c0_30 = arith.constant 0 : index
    %c128 = arith.constant 128 : index
    %26 = vector.load %arg1[%c0_29, %c0_30, %c128] : memref<1x8x384xbf16, #tpu.memory_space<vmem>>, vector<1x8x256xbf16>
    %27 = vector.shape_cast %26 : vector<1x8x256xbf16> to vector<8x256xbf16>
    %c64_31 = arith.constant 64 : index
    %c0_32 = arith.constant 0 : index
    %28 = vector.load %arg5[%c64_31, %c0_32] : memref<72x256xbf16, #tpu.memory_space<vmem>>, vector<8x256xbf16>
    tpu.vector_store %arg5[%c64_31, %c0_32], %27 {strides = array<i32>} : memref<72x256xbf16, #tpu.memory_space<vmem>>, vector<8x256xbf16>,
    %c0_33 = arith.constant 0 : index
    %c0_34 = arith.constant 0 : index
    %29 = vector.load %arg2[%c0_33, %c0_34] : memref<8x72xbf16, #tpu.memory_space<vmem>>, vector<8x72xbf16>
    %c0_35 = arith.constant 0 : index
    %c0_36 = arith.constant 0 : index
    %30 = vector.load %arg5[%c0_35, %c0_36] : memref<72x256xbf16, #tpu.memory_space<vmem>>, vector<72x256xbf16>
    %cst_37 = arith.constant dense<0.000000e+00> : vector<8x256xf32>
    %31 = tpu.matmul %29, %30, %cst_37 {dimension_numbers = #tpu.dot_dimension_numbers<[1], [0], [0], [1], [0, 0, 1, 1], [], []>} : vector<8x72xbf16>, vector<72x256xbf16>, vector<8x256xf32> -> vector<8x256xf32>
    %cst_38 = arith.constant dense<0.000000e+00> : vector<8xf32>
    %32 = vector.multi_reduction <add>, %31, %cst_38 [1] : vector<8x256xf32> to vector<8xf32>
    %33 = vector.shape_cast %32 : vector<8xf32> to vector<8x1xf32>
    %34 = arith.addf %0, %33 : vector<8x1xf32>
    %35 = arith.mulf %31, %31 : vector<8x256xf32>
    %cst_39 = arith.constant dense<0.000000e+00> : vector<8xf32>
    %36 = vector.multi_reduction <add>, %35, %cst_39 [1] : vector<8x256xf32> to vector<8xf32>
    %37 = vector.shape_cast %36 : vector<8xf32> to vector<8x1xf32>
    %38 = arith.addf %1, %37 : vector<8x1xf32>
    %c0_40 = arith.constant 0 : index
    %c0_41 = arith.constant 0 : index
    %c0_42 = arith.constant 0 : index
    %39 = vector.load %arg3[%c0_40, %c0_41, %c0_42] : memref<1x8x1xf32, #tpu.memory_space<vmem>>, vector<1x8x1xf32>
    %40 = vector.shape_cast %39 : vector<1x8x1xf32> to vector<8x1xf32>
    %41 = vector.shape_cast %34 : vector<8x1xf32> to vector<1x8x1xf32>
    tpu.vector_store %arg3[%c0_40, %c0_41, %c0_42], %41 {strides = array<i32>} : memref<1x8x1xf32, #tpu.memory_space<vmem>>, vector<1x8x1xf32>,
    %c0_43 = arith.constant 0 : index
    %c0_44 = arith.constant 0 : index
    %c0_45 = arith.constant 0 : index
    %42 = vector.load %arg4[%c0_43, %c0_44, %c0_45] : memref<1x8x1xf32, #tpu.memory_space<vmem>>, vector<1x8x1xf32>
    %43 = vector.shape_cast %42 : vector<1x8x1xf32> to vector<8x1xf32>
    %44 = vector.shape_cast %38 : vector<8x1xf32> to vector<1x8x1xf32>
    tpu.vector_store %arg4[%c0_43, %c0_44, %c0_45], %44 {strides = array<i32>} : memref<1x8x1xf32, #tpu.memory_space<vmem>>, vector<1x8x1xf32>,
    return
  }
  func.func @transform_0(%arg0: i32) -> (i32, i32, i32) {
    %c0_i32 = arith.constant 0 : i32
    %c0_i32_0 = arith.constant 0 : i32
    %c0_i32_1 = arith.constant 0 : i32
    return %arg0, %c0_i32, %c0_i32_0 : i32, i32, i32
  }
  func.func @transform_1(%arg0: i32) -> (i32, i32) {
    %c0_i32 = arith.constant 0 : i32
    %c0_i32_0 = arith.constant 0 : i32
    %c0_i32_1 = arith.constant 0 : i32
    return %c0_i32, %c0_i32_0 : i32, i32
  }
  func.func @transform_2(%arg0: i32) -> (i32, i32, i32) {
    %c0_i32 = arith.constant 0 : i32
    %c0_i32_0 = arith.constant 0 : i32
    %c0_i32_1 = arith.constant 0 : i32
    return %arg0, %c0_i32, %c0_i32_0 : i32, i32, i32
  }
  func.func @transform_3(%arg0: i32) -> (i32, i32, i32) {
    %c0_i32 = arith.constant 0 : i32
    %c0_i32_0 = arith.constant 0 : i32
    %c0_i32_1 = arith.constant 0 : i32
    return %arg0, %c0_i32, %c0_i32_0 : i32, i32, i32
  }
}

module attributes {stable_mosaic.version = 11 : i64} {
  func.func @_apply_kernel(%arg0: i32, %arg1: memref<1x8x384xbf16, #tpu.memory_space<vmem>>, %arg2: memref<8x72xbf16, #tpu.memory_space<vmem>>, %arg3: memref<8x1xf32, #tpu.memory_space<vmem>>, %arg4: memref<8x1xf32, #tpu.memory_space<vmem>>, %arg5: memref<1x8x256xf32, #tpu.memory_space<vmem>>, %arg6: memref<72x256xbf16, #tpu.memory_space<vmem>>) attributes {dimension_semantics = [#tpu.dimension_semantics<parallel>], iteration_bounds = array<i64: 2>, scalar_prefetch = 0 : i64, scratch_operands = 1 : i64, tpu.core_type = #tpu.core_type<tc>, window_params = [{transform_indices = @transform_0, window_bounds = array<i64: 1, 8, 384>}, {pipeline_mode = #tpu.pipeline_mode<synchronous>, transform_indices = @transform_1, window_bounds = array<i64: 8, 72>}, {pipeline_mode = #tpu.pipeline_mode<synchronous>, transform_indices = @transform_2, window_bounds = array<i64: 8, 1>}, {pipeline_mode = #tpu.pipeline_mode<synchronous>, transform_indices = @transform_3, window_bounds = array<i64: 8, 1>}, {transform_indices = @transform_4, window_bounds = array<i64: 1, 8, 256>}]} {
    %c0 = arith.constant 0 : index
    %c0_0 = arith.constant 0 : index
    %c0_1 = arith.constant 0 : index
    %0 = vector.load %arg1[%c0, %c0_0, %c0_1] : memref<1x8x384xbf16, #tpu.memory_space<vmem>>, vector<1x8x256xbf16>
    %1 = vector.shape_cast %0 : vector<1x8x256xbf16> to vector<8x256xbf16>
    %c0_2 = arith.constant 0 : index
    %c0_3 = arith.constant 0 : index
    %2 = vector.load %arg6[%c0_2, %c0_3] : memref<72x256xbf16, #tpu.memory_space<vmem>>, vector<8x256xbf16>
    tpu.vector_store %arg6[%c0_2, %c0_3], %1 {strides = array<i32>} : memref<72x256xbf16, #tpu.memory_space<vmem>>, vector<8x256xbf16>,
    %c0_4 = arith.constant 0 : index
    %c0_5 = arith.constant 0 : index
    %c16 = arith.constant 16 : index
    %3 = vector.load %arg1[%c0_4, %c0_5, %c16] : memref<1x8x384xbf16, #tpu.memory_space<vmem>>, vector<1x8x256xbf16>
    %4 = vector.shape_cast %3 : vector<1x8x256xbf16> to vector<8x256xbf16>
    %c8 = arith.constant 8 : index
    %c0_6 = arith.constant 0 : index
    %5 = vector.load %arg6[%c8, %c0_6] : memref<72x256xbf16, #tpu.memory_space<vmem>>, vector<8x256xbf16>
    tpu.vector_store %arg6[%c8, %c0_6], %4 {strides = array<i32>} : memref<72x256xbf16, #tpu.memory_space<vmem>>, vector<8x256xbf16>,
    %c0_7 = arith.constant 0 : index
    %c0_8 = arith.constant 0 : index
    %c32 = arith.constant 32 : index
    %6 = vector.load %arg1[%c0_7, %c0_8, %c32] : memref<1x8x384xbf16, #tpu.memory_space<vmem>>, vector<1x8x256xbf16>
    %7 = vector.shape_cast %6 : vector<1x8x256xbf16> to vector<8x256xbf16>
    %c16_9 = arith.constant 16 : index
    %c0_10 = arith.constant 0 : index
    %8 = vector.load %arg6[%c16_9, %c0_10] : memref<72x256xbf16, #tpu.memory_space<vmem>>, vector<8x256xbf16>
    tpu.vector_store %arg6[%c16_9, %c0_10], %7 {strides = array<i32>} : memref<72x256xbf16, #tpu.memory_space<vmem>>, vector<8x256xbf16>,
    %c0_11 = arith.constant 0 : index
    %c0_12 = arith.constant 0 : index
    %c48 = arith.constant 48 : index
    %9 = vector.load %arg1[%c0_11, %c0_12, %c48] : memref<1x8x384xbf16, #tpu.memory_space<vmem>>, vector<1x8x256xbf16>
    %10 = vector.shape_cast %9 : vector<1x8x256xbf16> to vector<8x256xbf16>
    %c24 = arith.constant 24 : index
    %c0_13 = arith.constant 0 : index
    %11 = vector.load %arg6[%c24, %c0_13] : memref<72x256xbf16, #tpu.memory_space<vmem>>, vector<8x256xbf16>
    tpu.vector_store %arg6[%c24, %c0_13], %10 {strides = array<i32>} : memref<72x256xbf16, #tpu.memory_space<vmem>>, vector<8x256xbf16>,
    %c0_14 = arith.constant 0 : index
    %c0_15 = arith.constant 0 : index
    %c64 = arith.constant 64 : index
    %12 = vector.load %arg1[%c0_14, %c0_15, %c64] : memref<1x8x384xbf16, #tpu.memory_space<vmem>>, vector<1x8x256xbf16>
    %13 = vector.shape_cast %12 : vector<1x8x256xbf16> to vector<8x256xbf16>
    %c32_16 = arith.constant 32 : index
    %c0_17 = arith.constant 0 : index
    %14 = vector.load %arg6[%c32_16, %c0_17] : memref<72x256xbf16, #tpu.memory_space<vmem>>, vector<8x256xbf16>
    tpu.vector_store %arg6[%c32_16, %c0_17], %13 {strides = array<i32>} : memref<72x256xbf16, #tpu.memory_space<vmem>>, vector<8x256xbf16>,
    %c0_18 = arith.constant 0 : index
    %c0_19 = arith.constant 0 : index
    %c80 = arith.constant 80 : index
    %15 = vector.load %arg1[%c0_18, %c0_19, %c80] : memref<1x8x384xbf16, #tpu.memory_space<vmem>>, vector<1x8x256xbf16>
    %16 = vector.shape_cast %15 : vector<1x8x256xbf16> to vector<8x256xbf16>
    %c40 = arith.constant 40 : index
    %c0_20 = arith.constant 0 : index
    %17 = vector.load %arg6[%c40, %c0_20] : memref<72x256xbf16, #tpu.memory_space<vmem>>, vector<8x256xbf16>
    tpu.vector_store %arg6[%c40, %c0_20], %16 {strides = array<i32>} : memref<72x256xbf16, #tpu.memory_space<vmem>>, vector<8x256xbf16>,
    %c0_21 = arith.constant 0 : index
    %c0_22 = arith.constant 0 : index
    %c96 = arith.constant 96 : index
    %18 = vector.load %arg1[%c0_21, %c0_22, %c96] : memref<1x8x384xbf16, #tpu.memory_space<vmem>>, vector<1x8x256xbf16>
    %19 = vector.shape_cast %18 : vector<1x8x256xbf16> to vector<8x256xbf16>
    %c48_23 = arith.constant 48 : index
    %c0_24 = arith.constant 0 : index
    %20 = vector.load %arg6[%c48_23, %c0_24] : memref<72x256xbf16, #tpu.memory_space<vmem>>, vector<8x256xbf16>
    tpu.vector_store %arg6[%c48_23, %c0_24], %19 {strides = array<i32>} : memref<72x256xbf16, #tpu.memory_space<vmem>>, vector<8x256xbf16>,
    %c0_25 = arith.constant 0 : index
    %c0_26 = arith.constant 0 : index
    %c112 = arith.constant 112 : index
    %21 = vector.load %arg1[%c0_25, %c0_26, %c112] : memref<1x8x384xbf16, #tpu.memory_space<vmem>>, vector<1x8x256xbf16>
    %22 = vector.shape_cast %21 : vector<1x8x256xbf16> to vector<8x256xbf16>
    %c56 = arith.constant 56 : index
    %c0_27 = arith.constant 0 : index
    %23 = vector.load %arg6[%c56, %c0_27] : memref<72x256xbf16, #tpu.memory_space<vmem>>, vector<8x256xbf16>
    tpu.vector_store %arg6[%c56, %c0_27], %22 {strides = array<i32>} : memref<72x256xbf16, #tpu.memory_space<vmem>>, vector<8x256xbf16>,
    %c0_28 = arith.constant 0 : index
    %c0_29 = arith.constant 0 : index
    %c128 = arith.constant 128 : index
    %24 = vector.load %arg1[%c0_28, %c0_29, %c128] : memref<1x8x384xbf16, #tpu.memory_space<vmem>>, vector<1x8x256xbf16>
    %25 = vector.shape_cast %24 : vector<1x8x256xbf16> to vector<8x256xbf16>
    %c64_30 = arith.constant 64 : index
    %c0_31 = arith.constant 0 : index
    %26 = vector.load %arg6[%c64_30, %c0_31] : memref<72x256xbf16, #tpu.memory_space<vmem>>, vector<8x256xbf16>
    tpu.vector_store %arg6[%c64_30, %c0_31], %25 {strides = array<i32>} : memref<72x256xbf16, #tpu.memory_space<vmem>>, vector<8x256xbf16>,
    %c0_32 = arith.constant 0 : index
    %c0_33 = arith.constant 0 : index
    %27 = vector.load %arg2[%c0_32, %c0_33] : memref<8x72xbf16, #tpu.memory_space<vmem>>, vector<8x72xbf16>
    %c0_34 = arith.constant 0 : index
    %c0_35 = arith.constant 0 : index
    %28 = vector.load %arg6[%c0_34, %c0_35] : memref<72x256xbf16, #tpu.memory_space<vmem>>, vector<72x256xbf16>
    %cst = arith.constant dense<0.000000e+00> : vector<8x256xf32>
    %29 = tpu.matmul %27, %28, %cst {dimension_numbers = #tpu.dot_dimension_numbers<[1], [0], [0], [1], [0, 0, 1, 1], [], []>} : vector<8x72xbf16>, vector<72x256xbf16>, vector<8x256xf32> -> vector<8x256xf32>
    %c0_36 = arith.constant 0 : index
    %c0_37 = arith.constant 0 : index
    %30 = vector.load %arg3[%c0_36, %c0_37] : memref<8x1xf32, #tpu.memory_space<vmem>>, vector<8x1xf32>
    %31 = vector.broadcast %30 : vector<8x1xf32> to vector<8x256xf32>
    %32 = arith.mulf %29, %31 : vector<8x256xf32>
    %c0_38 = arith.constant 0 : index
    %c0_39 = arith.constant 0 : index
    %33 = vector.load %arg4[%c0_38, %c0_39] : memref<8x1xf32, #tpu.memory_space<vmem>>, vector<8x1xf32>
    %34 = vector.broadcast %33 : vector<8x1xf32> to vector<8x256xf32>
    %35 = arith.addf %32, %34 : vector<8x256xf32>
    %c0_40 = arith.constant 0 : index
    %c0_41 = arith.constant 0 : index
    %c0_42 = arith.constant 0 : index
    %36 = vector.load %arg5[%c0_40, %c0_41, %c0_42] : memref<1x8x256xf32, #tpu.memory_space<vmem>>, vector<1x8x256xf32>
    %37 = vector.shape_cast %36 : vector<1x8x256xf32> to vector<8x256xf32>
    %38 = vector.shape_cast %35 : vector<8x256xf32> to vector<1x8x256xf32>
    tpu.vector_store %arg5[%c0_40, %c0_41, %c0_42], %38 {strides = array<i32>} : memref<1x8x256xf32, #tpu.memory_space<vmem>>, vector<1x8x256xf32>,
    return
  }
  func.func @transform_0(%arg0: i32) -> (i32, i32, i32) {
    %c0_i32 = arith.constant 0 : i32
    %c0_i32_0 = arith.constant 0 : i32
    %c0_i32_1 = arith.constant 0 : i32
    return %arg0, %c0_i32, %c0_i32_0 : i32, i32, i32
  }
  func.func @transform_1(%arg0: i32) -> (i32, i32) {
    %c0_i32 = arith.constant 0 : i32
    %c0_i32_0 = arith.constant 0 : i32
    %c0_i32_1 = arith.constant 0 : i32
    return %c0_i32, %c0_i32_0 : i32, i32
  }
  func.func @transform_2(%arg0: i32) -> (i32, i32) {
    %c0_i32 = arith.constant 0 : i32
    %c0_i32_0 = arith.constant 0 : i32
    %c0_i32_1 = arith.constant 0 : i32
    return %c0_i32, %c0_i32_0 : i32, i32
  }
  func.func @transform_3(%arg0: i32) -> (i32, i32) {
    %c0_i32 = arith.constant 0 : i32
    %c0_i32_0 = arith.constant 0 : i32
    %c0_i32_1 = arith.constant 0 : i32
    return %c0_i32, %c0_i32_0 : i32, i32
  }
  func.func @transform_4(%arg0: i32) -> (i32, i32, i32) {
    %c0_i32 = arith.constant 0 : i32
    %c0_i32_0 = arith.constant 0 : i32
    %c0_i32_1 = arith.constant 0 : i32
    return %arg0, %c0_i32, %c0_i32_0 : i32, i32, i32
  }
}

</mosaic_0001>

<bundles_post_ra>
// kernel: temporal_conv_forward.2
= control target key start
LH: loop header
LB: loop body
LE: loop exit
PB: predicated region body
PF: predicated region fallthrough
CT: control target
= control target key end

     0   :  { %s572_s12 = smov 0   ;;  %s630_s0 = inlined_call_operand.vmem [shape: bf16[2,8,384], index: 0, kind: input, shape index: {}]   ;;  %s631_s1 = inlined_call_operand.vmem [shape: bf16[8,72], index: 1, kind: input, shape index: {}]   ;;  %s632_s2 = inlined_call_operand.vmem [shape: f32[2,8,1], index: 2, kind: output, shape index: {0}]   ;;  %s633_s3 = inlined_call_operand.vmem [shape: f32[2,8,1], index: 3, kind: output, shape index: {1}]  }
   0x1 LB: > { %s495_s13 = sadd.s32 4294967295, %s542_s12   ;;  %p499_p0 = scmp.ge.s32.totalorder %s542_s12, 1  ;;  %s542_s12 = sphi %s572_s12, %s14_s12  }
   0x2   : > { %p140_p1 = scmp.lt.s32.totalorder %s542_s12, 3 }
   0x4   : > { %p141_p2 = pnand %p499_p0, %p140_p1 }
   0x5   : > { %p167_p3 = scmp.lt.s32.totalorder (!%p141_p2), %s495_s13, 1  ;;  %s544_s18 = smov (!%p141_p2), 16  }
   0x6   : > { %144 = sbr.rel (%p141_p2) target bundleno = 503 (0x1f7), region = 28  ;;  %s545_s19 = smov (!%p141_p2), 32  }
   0x7   : > { %s546_s20 = smov (!%p141_p2), 64   ;;  %s547_s21 = smov (!%p141_p2), 48  }
   0x8   : > { %s548_s22 = smov (!%p141_p2), 96   ;;  %s550_s23 = smov (!%p141_p2), 80  }
   0x9   : > { %s551_s24 = smov (!%p141_p2), 112  }
   0xb   : > { %s635_s13 = smov (!%p167_p3, %s495_s13), 1  ;;  %vm193_vm0 = vcmask 1043456   ;;  %v549_v11 = vmov 0   ;;  %vm270_vm1 = vcmask 261120   ;;  %vm285_vm2 = vcmask 130048  }
   0xc   : > { %s517_s14 = smul.u32 12, %s635_s13  ;;  %389 = vmatprep.mubr.bf16.mxu0 %v549_v11  ;;  %vm240_vm3 = vcmask 523264   ;;  %vm255_vm4 = vcmask 392192   ;;  %vm210_vm5 = vcmask 785408   ;;  %vm225_vm6 = vcmask 654336   ;;  %s501_s27 = sshll.u32 %s635_s13, 3 }
   0xd   : > { %vm195_vm7 = vcmask 916480   ;;  %v291_v63 = vld [vmem:[%s631_s1] sm:$0xf]  ;;  %vm346_vm8 = vcmask 588800   ;;  %s175_s30 = scalar_lea.vmem %s632_s2, %s501_s27  ;;  %vm408_vm9 = vcmask 7168   ;;  %s179_s6 = scalar_lea.vmem %s633_s3, %s501_s27 }
   0xe   : > { %s586_s17 = scalar_lea.vmem %s630_s0, %s517_s14 }
   0xf   : > { %v589_v0 = vld [vmem:[%s586_s17] sm:$0xff]  ;;  %v275_v1 = vld [vmem:[%s586_s17 + $0x8] sm:$0xf] }
  0x10   : > { %278 = vrot.lane.b32.xlu1 %v589_v0, %s544_s18  ;;  %263 = vrot.lane.b32.xlu0 %v589_v0, %s545_s19  ;;  %v260_v2 = vld [vmem:[%s586_s17 + $0x8] sm:$0xf] }
  0x11   : > { %v289_v3 = vld [vmem:[%s586_s17 + $0x4] sm:$0xff] }
  0x12   : > { %v512_v4 = vcombine.high %v289_v3, %v289_v3  ;;  %v511_v5 = vcombine.low %v289_v3, %v289_v3  ;;  %v230_v6 = vld [vmem:[%s586_s17 + $0x8] sm:$0xf] }
  0x13   : > { %v245_v8 = vld [vmem:[%s586_s17 + $0x8] sm:$0xf] }
  0x14   : > { %280 = vrot.lane.b32.xlu1 %v275_v1, %s544_s18  ;;  %265 = vrot.lane.b32.xlu0 %v260_v2, %s545_s19  ;;  %v352_v7 = vsel %vm193_vm0, %v511_v5, 0  ;;  %v200_v9 = vld [vmem:[%s586_s17 + $0x8] sm:$0xf] }
  0x15   : > { %513 = vmatprep.subr.msk.bf16.mxu0 %vm193_vm0, %v512_v4  ;;  %v215_v10 = vld [vmem:[%s586_s17 + $0x8] sm:$0xf] }
  0x16   : > { %364 = vmatpush1.bf16.msra.mxu0 %v352_v7  ;;  %v184_v12 = vld [vmem:[%s586_s17 + $0x8] sm:$0xf] }
  0x18   : > { %235 = vrot.lane.b32.xlu1 %v230_v6, %s546_s20  ;;  %233 = vrot.lane.b32.xlu0 %v589_v0, %s546_s20 }
  0x1c   : > { %250 = vrot.lane.b32.xlu1 %v245_v8, %s547_s21  ;;  %248 = vrot.lane.b32.xlu0 %v589_v0, %s547_s21 }
  0x20   : > { %205 = vrot.lane.b32.xlu1 %v200_v9, %s548_s22  ;;  %203 = vrot.lane.b32.xlu0 %v589_v0, %s548_s22 }
  0x24   : > { %220 = vrot.lane.b32.xlu1 %v215_v10, %s550_s23  ;;  %218 = vrot.lane.b32.xlu0 %v589_v0, %s550_s23 }
  0x28   : > { %189 = vrot.lane.b32.xlu1 %v184_v12, %s551_s24  ;;  %187 = vrot.lane.b32.xlu0 %v589_v0, %s551_s24 }
  0x82   : > { %v279_v13 = vpop.permute.xlu1 %278  ;;  %v264_v14 = vpop.permute.xlu0 %263 }
  0x83   : > { %v282_v17 = vrot.slane %v279_v13, 4  ;;  %v267_v18 = vrot.slane %v264_v14, 4 }
  0x86   : > { %v281_v15 = vpop.permute.xlu1 %280  ;;  %v266_v16 = vpop.permute.xlu0 %265 }
  0x87   : > { %v283_v19 = vrot.slane %v281_v15, 4  ;;  %v268_v20 = vrot.slane %v266_v16, 4 }
  0x89   : > { %v284_v21 = vsel %vm193_vm0, %v282_v17, %v283_v19  ;;  %v269_v22 = vsel %vm193_vm0, %v267_v18, %v268_v20 }
  0x8a   : > { %v236_v23 = vpop.permute.xlu1 %235  ;;  %v234_v24 = vpop.permute.xlu0 %233  ;;  %v271_v25 = vsel %vm270_vm1, %v264_v14, %v269_v22  ;;  %v286_v26 = vsel %vm285_vm2, %v279_v13, %v284_v21 }
  0x8b   : > { %v238_v27 = vrot.slane %v236_v23, 4  ;;  %v237_v28 = vrot.slane %v234_v24, 4  ;;  %v510_v29 = vcombine.high %v271_v25, %v286_v26  ;;  %v509_v30 = vcombine.low %v271_v25, %v286_v26 }
  0x8d   : > { %365 = vmatprep.subr.bf16.mxu0 %v510_v29  ;;  %v239_v33 = vsel %vm193_vm0, %v237_v28, %v238_v27 }
  0x8e   : > { %366 = vmatpush1.bf16.msra.mxu0 %v509_v30  ;;  %v251_v31 = vpop.permute.xlu1 %250  ;;  %v249_v32 = vpop.permute.xlu0 %248  ;;  %v241_v37 = vsel %vm240_vm3, %v234_v24, %v239_v33 }
  0x8f   : > { %v253_v34 = vrot.slane %v251_v31, 4  ;;  %v252_v35 = vrot.slane %v249_v32, 4 }
  0x91   : > { %v254_v36 = vsel %vm193_vm0, %v252_v35, %v253_v34 }
  0x92   : > { %v256_v38 = vsel %vm255_vm4, %v249_v32, %v254_v36  ;;  %v206_v39 = vpop.permute.xlu1 %205  ;;  %v204_v40 = vpop.permute.xlu0 %203 }
  0x93   : > { %v507_v41 = vcombine.low %v241_v37, %v256_v38  ;;  %v508_v42 = vcombine.high %v241_v37, %v256_v38  ;;  %v208_v43 = vrot.slane %v206_v39, 4  ;;  %v207_v44 = vrot.slane %v204_v40, 4 }
  0x95   : > { %367 = vmatprep.subr.bf16.mxu0 %v508_v42  ;;  %v209_v47 = vsel %vm193_vm0, %v207_v44, %v208_v43 }
  0x96   : > { %368 = vmatpush1.bf16.msra.mxu0 %v507_v41  ;;  %v221_v45 = vpop.permute.xlu1 %220  ;;  %v219_v46 = vpop.permute.xlu0 %218  ;;  %v211_v51 = vsel %vm210_vm5, %v204_v40, %v209_v47 }
  0x97   : > { %v223_v48 = vrot.slane %v221_v45, 4  ;;  %v222_v49 = vrot.slane %v219_v46, 4 }
  0x99   : > { %v224_v50 = vsel %vm193_vm0, %v222_v49, %v223_v48 }
  0x9a   : > { %v226_v52 = vsel %vm225_vm6, %v219_v46, %v224_v50  ;;  %v190_v53 = vpop.permute.xlu1 %189  ;;  %v188_v54 = vpop.permute.xlu0 %187 }
  0x9b   : > { %v505_v55 = vcombine.low %v211_v51, %v226_v52  ;;  %v506_v56 = vcombine.high %v211_v51, %v226_v52  ;;  %v192_v57 = vrot.slane %v190_v53, 4  ;;  %v191_v58 = vrot.slane %v188_v54, 4 }
  0x9d   : > { %v194_v59 = vsel %vm193_vm0, %v191_v58, %v192_v57  ;;  %369 = vmatprep.subr.bf16.mxu0 %v506_v56 }
  0x9e   : > { %v196_v60 = vsel %vm195_vm7, %v188_v54, %v194_v59  ;;  %370 = vmatpush1.bf16.msra.mxu0 %v505_v55 }
  0x9f   : > { %v503_v61 = vcombine.low %v589_v0, %v196_v60  ;;  %v504_v62 = vcombine.high %v589_v0, %v196_v60 }
  0xa1   : > { %371 = vmatprep.subr.bf16.mxu0 %v504_v62 }
  0xa2   : > { %372 = vmatpush1.bf16.msra.mxu0 %v503_v61 }
  0xa5   : > { %514 = vmatmul.mubr.msk.bf16.vlgmr.msra.gmra.mxu0 %vm346_vm8, %v291_v63 }
 0x165   : > { %v391_v1 = vpop.f32.mrf.mxu0 }
 0x166   : > { %v402_v3 = vmul.f32 %v391_v1, %v391_v1 }
 0x167   : > { %v393_v2 = vpop.f32.mrf.mxu0 }
 0x168   : > { %v403_v4 = vmul.f32 %v393_v2, %v393_v2  ;;  %v398_v5 = vadd.f32 %v393_v2, %v391_v1 }
 0x169   : > { %v395_v6 = vpop.f32.mrf.mxu0 }
 0x16a   : > { %399 = vadd.xlane.f32.xlu0 %v398_v5  ;;  %v404_v7 = vadd.f32 %v403_v4, %v402_v3 }
 0x16b   : > { %v396_v8 = vpop.f32.mrf.mxu0 }
 0x16c   : > { %405 = vadd.xlane.f32.xlu1 %v404_v7 }
 0x1f3   : > { %v400_v0 = vpop.xlane.xlu0 %399 }
 0x1f4   : > { %409 = vst.msk [vmem:[%s175_s30] sm:$0xff] %vm408_vm9, %v400_v0 }
 0x1f5   : > { %v406_v9 = vpop.xlane.xlu1 %405 }
 0x1f6   : > { %410 = vst.msk [vmem:[%s179_s6] sm:$0xff] %vm408_vm9, %v406_v9 }
 0x1f7 PF: > { %s14_s12 = sadd.s32 1, %s542_s12  }
 0x1f8   : > { %p11_p4 = scmp.ge.s32.totalorder %s14_s12, 4  }
 0x1fa   :  { %13 = sbr.rel (!%p11_p4) target bundleno = 1 (0x1), region = 70 }

// kernel: temporal_conv_forward.3
= control target key start
LH: loop header
LB: loop body
LE: loop exit
PB: predicated region body
PF: predicated region fallthrough
CT: control target
= control target key end

     0   :  { %s574_s15 = smov 0   ;;  %s635_s0 = inlined_call_operand.vmem [shape: bf16[2,8,384], index: 0, kind: input, shape index: {}]   ;;  %s636_s1 = inlined_call_operand.vmem [shape: bf16[8,72], index: 1, kind: input, shape index: {}]   ;;  %s637_s2 = inlined_call_operand.vmem [shape: f32[8,1], index: 2, kind: input, shape index: {}]   ;;  %s638_s3 = inlined_call_operand.vmem [shape: f32[8,1], index: 3, kind: input, shape index: {}]   ;;  %s639_s4 = inlined_call_operand.vmem [shape: f32[2,8,256], index: 4, kind: output, shape index: {}]  }
   0x1 LB: > { %s489_s16 = sadd.s32 4294967295, %s539_s15   ;;  %p493_p0 = scmp.ge.s32.totalorder %s539_s15, 1  ;;  %s539_s15 = sphi %s574_s15, %s14_s15  }
   0x2   : > { %p162_p1 = scmp.lt.s32.totalorder %s539_s15, 3 }
   0x4   : > { %p163_p2 = pnand %p493_p0, %p162_p1 }
   0x5   : > { %p188_p3 = scmp.lt.s32.totalorder (!%p163_p2), %s489_s16, 1  ;;  %s541_s21 = smov (!%p163_p2), 16  }
   0x6   : > { %166 = sbr.rel (%p163_p2) target bundleno = 365 (0x16d), region = 36  ;;  %s542_s22 = smov (!%p163_p2), 32  }
   0x7   : > { %s543_s23 = smov (!%p163_p2), 64   ;;  %s544_s24 = smov (!%p163_p2), 48  }
   0x8   : > { %s545_s25 = smov (!%p163_p2), 96   ;;  %s547_s26 = smov (!%p163_p2), 80  }
   0x9   : > { %s548_s27 = smov (!%p163_p2), 112  }
   0xb   : > { %s641_s16 = smov (!%p188_p3, %s489_s16), 1  ;;  %vm211_vm0 = vcmask 1043456   ;;  %v546_v11 = vmov 0   ;;  %v416_v13 = vld [vmem:[%s637_s2] sm:$0xff]  ;;  %vm288_vm1 = vcmask 261120   ;;  %vm303_vm2 = vcmask 130048  }
   0xc   : > { %s512_s17 = smul.u32 12, %s641_s16  ;;  %407 = vmatprep.mubr.bf16.mxu0 %v546_v11  ;;  %529 = vset.pattern.permute.xlu0 %v546_v11  ;;  %v424_v14 = vld [vmem:[%s638_s3] sm:$0xff]  ;;  %vm258_vm3 = vcmask 523264   ;;  %vm273_vm4 = vcmask 392192   ;;  %vm228_vm5 = vcmask 785408   ;;  %vm243_vm6 = vcmask 654336  }
   0xd   : > { %530 = vset.pattern.permute.xlu1 %v546_v11  ;;  %vm213_vm7 = vcmask 916480   ;;  %vm364_vm8 = vcmask 588800   ;;  %s511_s8 = sshll.u32 %s641_s16, 4 }
   0xe   : > { %s588_s20 = scalar_lea.vmem %s635_s0, %s512_s17  ;;  %s197_s11 = scalar_lea.vmem %s639_s4, %s511_s8 }
   0xf   : > { %v591_v0 = vld [vmem:[%s588_s20] sm:$0xff]  ;;  %v293_v1 = vld [vmem:[%s588_s20 + $0x8] sm:$0xf] }
  0x10   : > { %296 = vrot.lane.b32.xlu1 %v591_v0, %s541_s21  ;;  %281 = vrot.lane.b32.xlu0 %v591_v0, %s542_s22  ;;  %v278_v2 = vld [vmem:[%s588_s20 + $0x8] sm:$0xf] }
  0x11   : > { %v307_v3 = vld [vmem:[%s588_s20 + $0x4] sm:$0xff] }
  0x12   : > { %v506_v4 = vcombine.high %v307_v3, %v307_v3  ;;  %v505_v5 = vcombine.low %v307_v3, %v307_v3  ;;  %v248_v6 = vld [vmem:[%s588_s20 + $0x8] sm:$0xf] }
  0x13   : > { %v263_v8 = vld [vmem:[%s588_s20 + $0x8] sm:$0xf] }
  0x14   : > { %298 = vrot.lane.b32.xlu1 %v293_v1, %s541_s21  ;;  %283 = vrot.lane.b32.xlu0 %v278_v2, %s542_s22  ;;  %v370_v7 = vsel %vm211_vm0, %v505_v5, 0  ;;  %v218_v9 = vld [vmem:[%s588_s20 + $0x8] sm:$0xf]  ;;  %v309_v2 = vld [vmem:[%s636_s1] sm:$0xf] }
  0x15   : > { %507 = vmatprep.subr.msk.bf16.mxu0 %vm211_vm0, %v506_v4  ;;  %v233_v10 = vld [vmem:[%s588_s20 + $0x8] sm:$0xf] }
  0x16   : > { %382 = vmatpush1.bf16.msra.mxu0 %v370_v7  ;;  %v202_v12 = vld [vmem:[%s588_s20 + $0x8] sm:$0xf] }
  0x18   : > { %253 = vrot.lane.b32.xlu1 %v248_v6, %s543_s23  ;;  %251 = vrot.lane.b32.xlu0 %v591_v0, %s543_s23 }
  0x1c   : > { %268 = vrot.lane.b32.xlu1 %v263_v8, %s544_s24  ;;  %266 = vrot.lane.b32.xlu0 %v591_v0, %s544_s24 }
  0x20   : > { %223 = vrot.lane.b32.xlu1 %v218_v9, %s545_s25  ;;  %221 = vrot.lane.b32.xlu0 %v591_v0, %s545_s25 }
  0x24   : > { %238 = vrot.lane.b32.xlu1 %v233_v10, %s547_s26  ;;  %236 = vrot.lane.b32.xlu0 %v591_v0, %s547_s26 }
  0x28   : > { %207 = vrot.lane.b32.xlu1 %v202_v12, %s548_s27  ;;  %205 = vrot.lane.b32.xlu0 %v591_v0, %s548_s27 }
  0x2c   : > { %419 = vperm.xlu0 %529, %v416_v13   ;;  %427 = vperm.xlu1 %530, %v424_v14  }
  0x82   : > { %v297_v15 = vpop.permute.xlu1 %296  ;;  %v282_v16 = vpop.permute.xlu0 %281 }
  0x83   : > { %v300_v19 = vrot.slane %v297_v15, 4  ;;  %v285_v20 = vrot.slane %v282_v16, 4 }
  0x86   : > { %v299_v17 = vpop.permute.xlu1 %298  ;;  %v284_v18 = vpop.permute.xlu0 %283 }
  0x87   : > { %v301_v21 = vrot.slane %v299_v17, 4  ;;  %v286_v22 = vrot.slane %v284_v18, 4 }
  0x89   : > { %v302_v23 = vsel %vm211_vm0, %v300_v19, %v301_v21  ;;  %v287_v24 = vsel %vm211_vm0, %v285_v20, %v286_v22 }
  0x8a   : > { %v254_v25 = vpop.permute.xlu1 %253  ;;  %v252_v26 = vpop.permute.xlu0 %251  ;;  %v289_v27 = vsel %vm288_vm1, %v282_v16, %v287_v24  ;;  %v304_v28 = vsel %vm303_vm2, %v297_v15, %v302_v23 }
  0x8b   : > { %v256_v29 = vrot.slane %v254_v25, 4  ;;  %v255_v30 = vrot.slane %v252_v26, 4  ;;  %v504_v31 = vcombine.high %v289_v27, %v304_v28  ;;  %v503_v32 = vcombine.low %v289_v27, %v304_v28 }
  0x8d   : > { %383 = vmatprep.subr.bf16.mxu0 %v504_v31  ;;  %v257_v35 = vsel %vm211_vm0, %v255_v30, %v256_v29 }
  0x8e   : > { %384 = vmatpush1.bf16.msra.mxu0 %v503_v32  ;;  %v269_v33 = vpop.permute.xlu1 %268  ;;  %v267_v34 = vpop.permute.xlu0 %266  ;;  %v259_v39 = vsel %vm258_vm3, %v252_v26, %v257_v35 }
  0x8f   : > { %v271_v36 = vrot.slane %v269_v33, 4  ;;  %v270_v37 = vrot.slane %v267_v34, 4 }
  0x91   : > { %v272_v38 = vsel %vm211_vm0, %v270_v37, %v271_v36 }
  0x92   : > { %v274_v40 = vsel %vm273_vm4, %v267_v34, %v272_v38  ;;  %v224_v41 = vpop.permute.xlu1 %223  ;;  %v222_v42 = vpop.permute.xlu0 %221 }
  0x93   : > { %v501_v43 = vcombine.low %v259_v39, %v274_v40  ;;  %v502_v44 = vcombine.high %v259_v39, %v274_v40  ;;  %v226_v45 = vrot.slane %v224_v41, 4  ;;  %v225_v46 = vrot.slane %v222_v42, 4 }
  0x95   : > { %385 = vmatprep.subr.bf16.mxu0 %v502_v44  ;;  %v227_v49 = vsel %vm211_vm0, %v225_v46, %v226_v45 }
  0x96   : > { %386 = vmatpush1.bf16.msra.mxu0 %v501_v43  ;;  %v239_v47 = vpop.permute.xlu1 %238  ;;  %v237_v48 = vpop.permute.xlu0 %236  ;;  %v229_v53 = vsel %vm228_vm5, %v222_v42, %v227_v49 }
  0x97   : > { %v241_v50 = vrot.slane %v239_v47, 4  ;;  %v240_v51 = vrot.slane %v237_v48, 4 }
  0x99   : > { %v242_v52 = vsel %vm211_vm0, %v240_v51, %v241_v50 }
  0x9a   : > { %v244_v54 = vsel %vm243_vm6, %v237_v48, %v242_v52  ;;  %v208_v55 = vpop.permute.xlu1 %207  ;;  %v206_v56 = vpop.permute.xlu0 %205 }
  0x9b   : > { %v499_v57 = vcombine.low %v229_v53, %v244_v54  ;;  %v500_v58 = vcombine.high %v229_v53, %v244_v54  ;;  %v210_v59 = vrot.slane %v208_v55, 4  ;;  %v209_v60 = vrot.slane %v206_v56, 4 }
  0x9d   : > { %v212_v61 = vsel %vm211_vm0, %v209_v60, %v210_v59  ;;  %387 = vmatprep.subr.bf16.mxu0 %v500_v58 }
  0x9e   : > { %v214_v62 = vsel %vm213_vm7, %v206_v56, %v212_v61  ;;  %388 = vmatpush1.bf16.msra.mxu0 %v499_v57 }
  0x9f   : > { %v497_v63 = vcombine.low %v591_v0, %v214_v62  ;;  %v498_v1 = vcombine.high %v591_v0, %v214_v62 }
  0xa1   : > { %389 = vmatprep.subr.bf16.mxu0 %v498_v1 }
  0xa2   : > { %390 = vmatpush1.bf16.msra.mxu0 %v497_v63 }
  0xa5   : > { %508 = vmatmul.mubr.msk.bf16.vlgmr.msra.gmra.mxu0 %vm364_vm8, %v309_v2 }
  0xa7   : > { %v420_v3 = vpop.permute.xlu0 %419  ;;  %v428_v5 = vpop.permute.xlu1 %427 }
 0x165   : > { %v409_v4 = vpop.f32.mrf.mxu0 }
 0x166   : > { %v422_v6 = vmul.f32 %v420_v3, %v409_v4 }
 0x167   : > { %v411_v7 = vpop.f32.mrf.mxu0 }
 0x168   : > { %v430_v8 = vadd.f32 %v428_v5, %v422_v6  ;;  %v423_v0 = vmul.f32 %v420_v3, %v411_v7 }
 0x169   : > { %v413_v9 = vpop.f32.mrf.mxu0 }
 0x16a   : > { %432 = vst [vmem:[%s197_s11] sm:$0xff] %v430_v8  ;;  %v431_v10 = vadd.f32 %v428_v5, %v423_v0 }
 0x16b   : > { %v414_v11 = vpop.f32.mrf.mxu0 }
 0x16c   : > { %433 = vst [vmem:[%s197_s11 + $0x8] sm:$0xff] %v431_v10 }
 0x16d PF: > { %s14_s15 = sadd.s32 1, %s539_s15  }
 0x16e   : > { %p11_p4 = scmp.ge.s32.totalorder %s14_s15, 4  }
 0x170   :  { %13 = sbr.rel (!%p11_p4) target bundleno = 1 (0x1), region = 66 }

</bundles_post_ra>
